<compile_context>
chip_gen: v5e
topology: v5e:2x2
jax: 0.10.0
libtpu: 0.0.40
codegen_flags: <defaults>
</compile_context>

<pallas_src>
import functools

import jax
import jax.numpy as jnp
from jax.experimental import pallas as pl
from jax.experimental.pallas import tpu as pltpu


def _vmem_limit_bytes():
    """Generation-aware scoped-VMEM limit (leave ~half the chip's VMEM free)."""
    cap = None
    try:
        cap = getattr(pltpu.get_tpu_info(), "vmem_capacity_bytes", None)
    except Exception:
        cap = None
    if not cap:
        return 32 * 1024 * 1024          # safe default (v7x has only 64 MiB)
    return int(min(64 * 1024 * 1024, cap // 2))


def _row_tiling(n):
    """Pick a row tile (multiple of 8, or == n) and the padded node count."""
    if n <= 16:
        return n, n                       # single tiny step; block == full array
    if n <= 1024:
        # split roughly in half so a v7x megacore gets >= 2 "parallel" steps
        row_tile = (((n + 1) // 2) + 7) // 8 * 8
    else:
        row_tile = 512                    # tall tiles amortize per-step overhead
    n_pad = (n + row_tile - 1) // row_tile * row_tile
    return row_tile, n_pad


def _gat_attn_kernel(a_src_ref, a_dst_ref, mask_ref, xh_ref, bias_ref, o_ref, *,
                     heads, negative_slope, apply_relu):
    # Additive edge mask for this row tile: 0 on edges, -3e4 elsewhere.
    mask = mask_ref[...].astype(jnp.float32)                    # [TN, N]
    a_src = a_src_ref[...]                                      # [H, N] lane-major
    a_dst = a_dst_ref[...]                                      # [TN, H]

    acc = jnp.zeros((a_dst.shape[0], o_ref.shape[-1]), jnp.float32)
    for h in range(heads):                                      # static unroll
        # Raw attention logit for edge j -> i:  a_dst[i] + a_src[j].
        raw = a_dst[:, h:h + 1] + a_src[h:h + 1, :]             # [TN, N]
        raw = jnp.maximum(raw, negative_slope * raw)            # LeakyReLU (1 op)
        logits = raw + mask                                     # kill non-edges
        # Row-wise softmax over source nodes (f32 elementwise, EUP reciprocal).
        logits = logits - jnp.max(logits, axis=-1, keepdims=True)
        p = jnp.exp(logits)
        inv = pl.reciprocal(jnp.sum(p, axis=-1, keepdims=True), approx=True)
        attn = (p * inv).astype(jnp.bfloat16)                   # [TN, N]
        # Aggregate messages on the MXU (bf16 operands, f32 accumulation),
        # summing heads into one accumulator (folds the concat=False mean).
        acc = acc + jnp.dot(attn, xh_ref[h],
                            preferred_element_type=jnp.float32)  # [TN, C]

    out = acc * (1.0 / heads) + bias_ref[...]                   # mean + bias
    if apply_relu:
        out = jnp.maximum(out, 0.0)
    o_ref[...] = out.astype(o_ref.dtype)


def gat_conv(x, mask_bias, w, att_src, att_dst, bias, *, heads, apply_relu):
    """One GATConv(in, out, heads, concat=False) layer (Pallas attention kernel)."""
    n, _ = x.shape
    hc = w.shape[-1]
    c = hc // heads

    # ---- Hoisted out of the kernel: computed ONCE, not per row tile ---------
    # Wide projection for all heads (bf16 MXU operands, f32 accumulation).
    xh = jnp.dot(x.astype(jnp.bfloat16), w.astype(jnp.bfloat16),
                 preferred_element_type=jnp.float32)             # [N, H*C]
    xh3 = xh.reshape(n, heads, c)
    a_src = jnp.einsum('nhc,hc->hn', xh3, att_src)               # [H, N]
    a_dst = jnp.einsum('nhc,hc->nh', xh3, att_dst)               # [N, H]
    xh_hnc = jnp.transpose(xh3, (1, 0, 2)).astype(jnp.bfloat16)  # [H, N, C]

    row_tile, n_pad = _row_tiling(n)
    if n_pad != n:
        pad = n_pad - n
        a_dst = jnp.pad(a_dst, ((0, pad), (0, 0)))
        mask_bias = jnp.pad(mask_bias, ((0, pad), (0, 0)))
    num_tiles = n_pad // row_tile

    kernel = functools.partial(_gat_attn_kernel, heads=heads,
                               negative_slope=0.2, apply_relu=apply_relu)

    out = pl.pallas_call(
        kernel,
        out_shape=jax.ShapeDtypeStruct((n_pad, c), jnp.float32),
        grid_spec=pltpu.PrefetchScalarGridSpec(
            num_scalar_prefetch=0,
            grid=(num_tiles,),
            in_specs=[
                pl.BlockSpec((heads, n), lambda i: (0, 0)),          # a_src (all)
                pl.BlockSpec((row_tile, heads), lambda i: (i, 0)),   # a_dst tile
                pl.BlockSpec((row_tile, n), lambda i: (i, 0)),       # bf16 mask tile
                pl.BlockSpec((heads, n, c), lambda i: (0, 0, 0)),    # xh [H,N,C]
                pl.BlockSpec((1, c), lambda i: (0, 0)),              # bias
            ],
            out_specs=pl.BlockSpec((row_tile, c), lambda i: (i, 0)),
        ),
        compiler_params=pltpu.CompilerParams(
            dimension_semantics=("parallel",),
            vmem_limit_bytes=_vmem_limit_bytes()),
    )(a_src, a_dst, mask_bias, xh_hnc, bias.reshape(1, c))

    return out[:n]


def edge_mask_bias(edge_index, num_nodes):
    """Additive mask: 0 where edge j->i (or self loop) exists, -3e4 elsewhere."""
    src, dst = edge_index[0], edge_index[1]
    m = jnp.full((num_nodes, num_nodes), -3e4, jnp.float32)
    m = m.at[dst, src].set(0.0)                    # edge j -> i lives at m[i, j]
    idx = jnp.arange(num_nodes)
    m = m.at[idx, idx].set(0.0)                    # add_self_loops=True
    return m.astype(jnp.bfloat16)                  # halve N^2 DMA bytes


def init_gat_params(key, in_feats, h_feats, out_feats, heads=8):
    def layer(k, fin, fout):
        k1, k2, k3 = jax.random.split(k, 3)
        scale = 1.0 / jnp.sqrt(jnp.float32(fin))
        w = jax.random.normal(k1, (fin, heads * fout), jnp.float32) * scale
        att_src = jax.random.normal(k2, (heads, fout), jnp.float32) * 0.1
        att_dst = jax.random.normal(k3, (heads, fout), jnp.float32) * 0.1
        bias = jnp.zeros((fout,), jnp.float32)
        return (w, att_src, att_dst, bias)

    k1, k2 = jax.random.split(key)
    return {"conv1": layer(k1, in_feats, h_feats),
            "conv2": layer(k2, h_feats, out_feats)}


def gat_forward(x, edge_index, params, heads=8):
    n = x.shape[0]
    mask_bias = edge_mask_bias(edge_index, n)
    h = gat_conv(x, mask_bias, *params["conv1"], heads=heads, apply_relu=True)
    # F.dropout(x, training=False) -> identity in eval mode.
    out = gat_conv(h, mask_bias, *params["conv2"], heads=heads, apply_relu=False)
    return out


if __name__ == "__main__":
    key = jax.random.PRNGKey(0)
    k_x, k_e, k_p = jax.random.split(key, 3)

    num_nodes, num_edges = 32, 64
    in_feats, h_feats, out_feats = 16, 32, 8

    x = jax.random.normal(k_x, (num_nodes, in_feats), jnp.float32)
    edge_index = jax.random.randint(k_e, (2, num_edges), 0, num_nodes,
                                    dtype=jnp.int32)

    params = init_gat_params(k_p, in_feats, h_feats, out_feats, heads=8)

    out = gat_forward(x, edge_index, params, heads=8)
    out = jax.block_until_ready(out)

    assert out.shape == (num_nodes, out_feats)
    assert bool(jnp.all(jnp.isfinite(out)))
    print("KERNEL_OK")
</pallas_src>

<mosaic_0001>
module attributes {stable_mosaic.version = 11 : i64} {
  func.func @_gat_attn_kernel(%arg0: i32, %arg1: memref<8x32xf32, #tpu.memory_space<vmem>>, %arg2: memref<16x8xf32, #tpu.memory_space<vmem>>, %arg3: memref<16x32xbf16, #tpu.memory_space<vmem>>, %arg4: memref<8x32x32xbf16, #tpu.memory_space<vmem>>, %arg5: memref<1x32xf32, #tpu.memory_space<vmem>>, %arg6: memref<16x32xf32, #tpu.memory_space<vmem>>) attributes {dimension_semantics = [#tpu.dimension_semantics<parallel>], iteration_bounds = array<i64: 2>, scalar_prefetch = 0 : i64, scratch_operands = 0 : i64, tpu.core_type = #tpu.core_type<tc>, window_params = [{pipeline_mode = #tpu.pipeline_mode<synchronous>, transform_indices = @transform_0, window_bounds = array<i64: 8, 32>}, {transform_indices = @transform_1, window_bounds = array<i64: 16, 8>}, {transform_indices = @transform_2, window_bounds = array<i64: 16, 32>}, {pipeline_mode = #tpu.pipeline_mode<synchronous>, transform_indices = @transform_3, window_bounds = array<i64: 8, 32, 32>}, {pipeline_mode = #tpu.pipeline_mode<synchronous>, transform_indices = @transform_4, window_bounds = array<i64: 1, 32>}, {transform_indices = @transform_5, window_bounds = array<i64: 16, 32>}]} {
    %c0 = arith.constant 0 : index
    %c0_0 = arith.constant 0 : index
    %0 = vector.load %arg3[%c0, %c0_0] : memref<16x32xbf16, #tpu.memory_space<vmem>>, vector<16x32xbf16>
    %1 = arith.extf %0 : vector<16x32xbf16> to vector<16x32xf32>
    %c0_1 = arith.constant 0 : index
    %c0_2 = arith.constant 0 : index
    %2 = vector.load %arg1[%c0_1, %c0_2] : memref<8x32xf32, #tpu.memory_space<vmem>>, vector<8x32xf32>
    %c0_3 = arith.constant 0 : index
    %c0_4 = arith.constant 0 : index
    %3 = vector.load %arg2[%c0_3, %c0_4] : memref<16x8xf32, #tpu.memory_space<vmem>>, vector<16x8xf32>
    %cst = arith.constant 0.000000e+00 : f32
    %4 = vector.broadcast %cst : f32 to vector<16x32xf32>
    %5 = vector.extract_strided_slice %3 {offsets = [0, 0], sizes = [16, 1], strides = [1, 1]} : vector<16x8xf32> to vector<16x1xf32>
    %6 = vector.extract_strided_slice %2 {offsets = [0, 0], sizes = [1, 32], strides = [1, 1]} : vector<8x32xf32> to vector<1x32xf32>
    %7 = vector.broadcast %5 : vector<16x1xf32> to vector<16x32xf32>
    %8 = vector.broadcast %6 : vector<1x32xf32> to vector<16x32xf32>
    %9 = arith.addf %7, %8 : vector<16x32xf32>
    %cst_5 = arith.constant 2.000000e-01 : f32
    %10 = vector.broadcast %cst_5 : f32 to vector<16x32xf32>
    %11 = arith.mulf %10, %9 : vector<16x32xf32>
    %12 = arith.maximumf %9, %11 : vector<16x32xf32>
    %13 = arith.addf %12, %1 : vector<16x32xf32>
    %cst_6 = arith.constant dense<0xFF800000> : vector<16xf32>
    %14 = vector.multi_reduction <maximumf>, %13, %cst_6 [1] : vector<16x32xf32> to vector<16xf32>
    %15 = vector.shape_cast %14 : vector<16xf32> to vector<16x1xf32>
    %16 = vector.broadcast %15 : vector<16x1xf32> to vector<16x32xf32>
    %17 = arith.subf %13, %16 : vector<16x32xf32>
    %18 = math.exp %17 : vector<16x32xf32>
    %cst_7 = arith.constant dense<0.000000e+00> : vector<16xf32>
    %19 = vector.multi_reduction <add>, %18, %cst_7 [1] : vector<16x32xf32> to vector<16xf32>
    %20 = vector.shape_cast %19 : vector<16xf32> to vector<16x1xf32>
    %21 = tpu.reciprocal %20 {approx = true} : vector<16x1xf32> -> vector<16x1xf32>
    %22 = vector.broadcast %21 : vector<16x1xf32> to vector<16x32xf32>
    %23 = arith.mulf %18, %22 : vector<16x32xf32>
    %24 = arith.truncf %23 : vector<16x32xf32> to vector<16x32xbf16>
    %c0_8 = arith.constant 0 : index
    %c0_9 = arith.constant 0 : index
    %c0_10 = arith.constant 0 : index
    %25 = vector.load %arg4[%c0_8, %c0_9, %c0_10] : memref<8x32x32xbf16, #tpu.memory_space<vmem>>, vector<1x32x32xbf16>
    %26 = vector.shape_cast %25 : vector<1x32x32xbf16> to vector<32x32xbf16>
    %cst_11 = arith.constant dense<0.000000e+00> : vector<16x32xf32>
    %27 = tpu.matmul %24, %26, %cst_11 {dimension_numbers = #tpu.dot_dimension_numbers<[1], [0], [0], [1], [0, 0, 1, 1], [], []>} : vector<16x32xbf16>, vector<32x32xbf16>, vector<16x32xf32> -> vector<16x32xf32>
    %28 = arith.addf %4, %27 : vector<16x32xf32>
    %29 = vector.extract_strided_slice %3 {offsets = [0, 1], sizes = [16, 1], strides = [1, 1]} : vector<16x8xf32> to vector<16x1xf32>
    %30 = vector.extract_strided_slice %2 {offsets = [1, 0], sizes = [1, 32], strides = [1, 1]} : vector<8x32xf32> to vector<1x32xf32>
    %31 = vector.broadcast %29 : vector<16x1xf32> to vector<16x32xf32>
    %32 = vector.broadcast %30 : vector<1x32xf32> to vector<16x32xf32>
    %33 = arith.addf %31, %32 : vector<16x32xf32>
    %cst_12 = arith.constant 2.000000e-01 : f32
    %34 = vector.broadcast %cst_12 : f32 to vector<16x32xf32>
    %35 = arith.mulf %34, %33 : vector<16x32xf32>
    %36 = arith.maximumf %33, %35 : vector<16x32xf32>
    %37 = arith.addf %36, %1 : vector<16x32xf32>
    %cst_13 = arith.constant dense<0xFF800000> : vector<16xf32>
    %38 = vector.multi_reduction <maximumf>, %37, %cst_13 [1] : vector<16x32xf32> to vector<16xf32>
    %39 = vector.shape_cast %38 : vector<16xf32> to vector<16x1xf32>
    %40 = vector.broadcast %39 : vector<16x1xf32> to vector<16x32xf32>
    %41 = arith.subf %37, %40 : vector<16x32xf32>
    %42 = math.exp %41 : vector<16x32xf32>
    %cst_14 = arith.constant dense<0.000000e+00> : vector<16xf32>
    %43 = vector.multi_reduction <add>, %42, %cst_14 [1] : vector<16x32xf32> to vector<16xf32>
    %44 = vector.shape_cast %43 : vector<16xf32> to vector<16x1xf32>
    %45 = tpu.reciprocal %44 {approx = true} : vector<16x1xf32> -> vector<16x1xf32>
    %46 = vector.broadcast %45 : vector<16x1xf32> to vector<16x32xf32>
    %47 = arith.mulf %42, %46 : vector<16x32xf32>
    %48 = arith.truncf %47 : vector<16x32xf32> to vector<16x32xbf16>
    %c1 = arith.constant 1 : index
    %c0_15 = arith.constant 0 : index
    %c0_16 = arith.constant 0 : index
    %49 = vector.load %arg4[%c1, %c0_15, %c0_16] : memref<8x32x32xbf16, #tpu.memory_space<vmem>>, vector<1x32x32xbf16>
    %50 = vector.shape_cast %49 : vector<1x32x32xbf16> to vector<32x32xbf16>
    %cst_17 = arith.constant dense<0.000000e+00> : vector<16x32xf32>
    %51 = tpu.matmul %48, %50, %cst_17 {dimension_numbers = #tpu.dot_dimension_numbers<[1], [0], [0], [1], [0, 0, 1, 1], [], []>} : vector<16x32xbf16>, vector<32x32xbf16>, vector<16x32xf32> -> vector<16x32xf32>
    %52 = arith.addf %28, %51 : vector<16x32xf32>
    %53 = vector.extract_strided_slice %3 {offsets = [0, 2], sizes = [16, 1], strides = [1, 1]} : vector<16x8xf32> to vector<16x1xf32>
    %54 = vector.extract_strided_slice %2 {offsets = [2, 0], sizes = [1, 32], strides = [1, 1]} : vector<8x32xf32> to vector<1x32xf32>
    %55 = vector.broadcast %53 : vector<16x1xf32> to vector<16x32xf32>
    %56 = vector.broadcast %54 : vector<1x32xf32> to vector<16x32xf32>
    %57 = arith.addf %55, %56 : vector<16x32xf32>
    %cst_18 = arith.constant 2.000000e-01 : f32
    %58 = vector.broadcast %cst_18 : f32 to vector<16x32xf32>
    %59 = arith.mulf %58, %57 : vector<16x32xf32>
    %60 = arith.maximumf %57, %59 : vector<16x32xf32>
    %61 = arith.addf %60, %1 : vector<16x32xf32>
    %cst_19 = arith.constant dense<0xFF800000> : vector<16xf32>
    %62 = vector.multi_reduction <maximumf>, %61, %cst_19 [1] : vector<16x32xf32> to vector<16xf32>
    %63 = vector.shape_cast %62 : vector<16xf32> to vector<16x1xf32>
    %64 = vector.broadcast %63 : vector<16x1xf32> to vector<16x32xf32>
    %65 = arith.subf %61, %64 : vector<16x32xf32>
    %66 = math.exp %65 : vector<16x32xf32>
    %cst_20 = arith.constant dense<0.000000e+00> : vector<16xf32>
    %67 = vector.multi_reduction <add>, %66, %cst_20 [1] : vector<16x32xf32> to vector<16xf32>
    %68 = vector.shape_cast %67 : vector<16xf32> to vector<16x1xf32>
    %69 = tpu.reciprocal %68 {approx = true} : vector<16x1xf32> -> vector<16x1xf32>
    %70 = vector.broadcast %69 : vector<16x1xf32> to vector<16x32xf32>
    %71 = arith.mulf %66, %70 : vector<16x32xf32>
    %72 = arith.truncf %71 : vector<16x32xf32> to vector<16x32xbf16>
    %c2 = arith.constant 2 : index
    %c0_21 = arith.constant 0 : index
    %c0_22 = arith.constant 0 : index
    %73 = vector.load %arg4[%c2, %c0_21, %c0_22] : memref<8x32x32xbf16, #tpu.memory_space<vmem>>, vector<1x32x32xbf16>
    %74 = vector.shape_cast %73 : vector<1x32x32xbf16> to vector<32x32xbf16>
    %cst_23 = arith.constant dense<0.000000e+00> : vector<16x32xf32>
    %75 = tpu.matmul %72, %74, %cst_23 {dimension_numbers = #tpu.dot_dimension_numbers<[1], [0], [0], [1], [0, 0, 1, 1], [], []>} : vector<16x32xbf16>, vector<32x32xbf16>, vector<16x32xf32> -> vector<16x32xf32>
    %76 = arith.addf %52, %75 : vector<16x32xf32>
    %77 = vector.extract_strided_slice %3 {offsets = [0, 3], sizes = [16, 1], strides = [1, 1]} : vector<16x8xf32> to vector<16x1xf32>
    %78 = vector.extract_strided_slice %2 {offsets = [3, 0], sizes = [1, 32], strides = [1, 1]} : vector<8x32xf32> to vector<1x32xf32>
    %79 = vector.broadcast %77 : vector<16x1xf32> to vector<16x32xf32>
    %80 = vector.broadcast %78 : vector<1x32xf32> to vector<16x32xf32>
    %81 = arith.addf %79, %80 : vector<16x32xf32>
    %cst_24 = arith.constant 2.000000e-01 : f32
    %82 = vector.broadcast %cst_24 : f32 to vector<16x32xf32>
    %83 = arith.mulf %82, %81 : vector<16x32xf32>
    %84 = arith.maximumf %81, %83 : vector<16x32xf32>
    %85 = arith.addf %84, %1 : vector<16x32xf32>
    %cst_25 = arith.constant dense<0xFF800000> : vector<16xf32>
    %86 = vector.multi_reduction <maximumf>, %85, %cst_25 [1] : vector<16x32xf32> to vector<16xf32>
    %87 = vector.shape_cast %86 : vector<16xf32> to vector<16x1xf32>
    %88 = vector.broadcast %87 : vector<16x1xf32> to vector<16x32xf32>
    %89 = arith.subf %85, %88 : vector<16x32xf32>
    %90 = math.exp %89 : vector<16x32xf32>
    %cst_26 = arith.constant dense<0.000000e+00> : vector<16xf32>
    %91 = vector.multi_reduction <add>, %90, %cst_26 [1] : vector<16x32xf32> to vector<16xf32>
    %92 = vector.shape_cast %91 : vector<16xf32> to vector<16x1xf32>
    %93 = tpu.reciprocal %92 {approx = true} : vector<16x1xf32> -> vector<16x1xf32>
    %94 = vector.broadcast %93 : vector<16x1xf32> to vector<16x32xf32>
    %95 = arith.mulf %90, %94 : vector<16x32xf32>
    %96 = arith.truncf %95 : vector<16x32xf32> to vector<16x32xbf16>
    %c3 = arith.constant 3 : index
    %c0_27 = arith.constant 0 : index
    %c0_28 = arith.constant 0 : index
    %97 = vector.load %arg4[%c3, %c0_27, %c0_28] : memref<8x32x32xbf16, #tpu.memory_space<vmem>>, vector<1x32x32xbf16>
    %98 = vector.shape_cast %97 : vector<1x32x32xbf16> to vector<32x32xbf16>
    %cst_29 = arith.constant dense<0.000000e+00> : vector<16x32xf32>
    %99 = tpu.matmul %96, %98, %cst_29 {dimension_numbers = #tpu.dot_dimension_numbers<[1], [0], [0], [1], [0, 0, 1, 1], [], []>} : vector<16x32xbf16>, vector<32x32xbf16>, vector<16x32xf32> -> vector<16x32xf32>
    %100 = arith.addf %76, %99 : vector<16x32xf32>
    %101 = vector.extract_strided_slice %3 {offsets = [0, 4], sizes = [16, 1], strides = [1, 1]} : vector<16x8xf32> to vector<16x1xf32>
    %102 = vector.extract_strided_slice %2 {offsets = [4, 0], sizes = [1, 32], strides = [1, 1]} : vector<8x32xf32> to vector<1x32xf32>
    %103 = vector.broadcast %101 : vector<16x1xf32> to vector<16x32xf32>
    %104 = vector.broadcast %102 : vector<1x32xf32> to vector<16x32xf32>
    %105 = arith.addf %103, %104 : vector<16x32xf32>
    %cst_30 = arith.constant 2.000000e-01 : f32
    %106 = vector.broadcast %cst_30 : f32 to vector<16x32xf32>
    %107 = arith.mulf %106, %105 : vector<16x32xf32>
    %108 = arith.maximumf %105, %107 : vector<16x32xf32>
    %109 = arith.addf %108, %1 : vector<16x32xf32>
    %cst_31 = arith.constant dense<0xFF800000> : vector<16xf32>
    %110 = vector.multi_reduction <maximumf>, %109, %cst_31 [1] : vector<16x32xf32> to vector<16xf32>
    %111 = vector.shape_cast %110 : vector<16xf32> to vector<16x1xf32>
    %112 = vector.broadcast %111 : vector<16x1xf32> to vector<16x32xf32>
    %113 = arith.subf %109, %112 : vector<16x32xf32>
    %114 = math.exp %113 : vector<16x32xf32>
    %cst_32 = arith.constant dense<0.000000e+00> : vector<16xf32>
    %115 = vector.multi_reduction <add>, %114, %cst_32 [1] : vector<16x32xf32> to vector<16xf32>
    %116 = vector.shape_cast %115 : vector<16xf32> to vector<16x1xf32>
    %117 = tpu.reciprocal %116 {approx = true} : vector<16x1xf32> -> vector<16x1xf32>
    %118 = vector.broadcast %117 : vector<16x1xf32> to vector<16x32xf32>
    %119 = arith.mulf %114, %118 : vector<16x32xf32>
    %120 = arith.truncf %119 : vector<16x32xf32> to vector<16x32xbf16>
    %c4 = arith.constant 4 : index
    %c0_33 = arith.constant 0 : index
    %c0_34 = arith.constant 0 : index
    %121 = vector.load %arg4[%c4, %c0_33, %c0_34] : memref<8x32x32xbf16, #tpu.memory_space<vmem>>, vector<1x32x32xbf16>
    %122 = vector.shape_cast %121 : vector<1x32x32xbf16> to vector<32x32xbf16>
    %cst_35 = arith.constant dense<0.000000e+00> : vector<16x32xf32>
    %123 = tpu.matmul %120, %122, %cst_35 {dimension_numbers = #tpu.dot_dimension_numbers<[1], [0], [0], [1], [0, 0, 1, 1], [], []>} : vector<16x32xbf16>, vector<32x32xbf16>, vector<16x32xf32> -> vector<16x32xf32>
    %124 = arith.addf %100, %123 : vector<16x32xf32>
    %125 = vector.extract_strided_slice %3 {offsets = [0, 5], sizes = [16, 1], strides = [1, 1]} : vector<16x8xf32> to vector<16x1xf32>
    %126 = vector.extract_strided_slice %2 {offsets = [5, 0], sizes = [1, 32], strides = [1, 1]} : vector<8x32xf32> to vector<1x32xf32>
    %127 = vector.broadcast %125 : vector<16x1xf32> to vector<16x32xf32>
    %128 = vector.broadcast %126 : vector<1x32xf32> to vector<16x32xf32>
    %129 = arith.addf %127, %128 : vector<16x32xf32>
    %cst_36 = arith.constant 2.000000e-01 : f32
    %130 = vector.broadcast %cst_36 : f32 to vector<16x32xf32>
    %131 = arith.mulf %130, %129 : vector<16x32xf32>
    %132 = arith.maximumf %129, %131 : vector<16x32xf32>
    %133 = arith.addf %132, %1 : vector<16x32xf32>
    %cst_37 = arith.constant dense<0xFF800000> : vector<16xf32>
    %134 = vector.multi_reduction <maximumf>, %133, %cst_37 [1] : vector<16x32xf32> to vector<16xf32>
    %135 = vector.shape_cast %134 : vector<16xf32> to vector<16x1xf32>
    %136 = vector.broadcast %135 : vector<16x1xf32> to vector<16x32xf32>
    %137 = arith.subf %133, %136 : vector<16x32xf32>
    %138 = math.exp %137 : vector<16x32xf32>
    %cst_38 = arith.constant dense<0.000000e+00> : vector<16xf32>
    %139 = vector.multi_reduction <add>, %138, %cst_38 [1] : vector<16x32xf32> to vector<16xf32>
    %140 = vector.shape_cast %139 : vector<16xf32> to vector<16x1xf32>
    %141 = tpu.reciprocal %140 {approx = true} : vector<16x1xf32> -> vector<16x1xf32>
    %142 = vector.broadcast %141 : vector<16x1xf32> to vector<16x32xf32>
    %143 = arith.mulf %138, %142 : vector<16x32xf32>
    %144 = arith.truncf %143 : vector<16x32xf32> to vector<16x32xbf16>
    %c5 = arith.constant 5 : index
    %c0_39 = arith.constant 0 : index
    %c0_40 = arith.constant 0 : index
    %145 = vector.load %arg4[%c5, %c0_39, %c0_40] : memref<8x32x32xbf16, #tpu.memory_space<vmem>>, vector<1x32x32xbf16>
    %146 = vector.shape_cast %145 : vector<1x32x32xbf16> to vector<32x32xbf16>
    %cst_41 = arith.constant dense<0.000000e+00> : vector<16x32xf32>
    %147 = tpu.matmul %144, %146, %cst_41 {dimension_numbers = #tpu.dot_dimension_numbers<[1], [0], [0], [1], [0, 0, 1, 1], [], []>} : vector<16x32xbf16>, vector<32x32xbf16>, vector<16x32xf32> -> vector<16x32xf32>
    %148 = arith.addf %124, %147 : vector<16x32xf32>
    %149 = vector.extract_strided_slice %3 {offsets = [0, 6], sizes = [16, 1], strides = [1, 1]} : vector<16x8xf32> to vector<16x1xf32>
    %150 = vector.extract_strided_slice %2 {offsets = [6, 0], sizes = [1, 32], strides = [1, 1]} : vector<8x32xf32> to vector<1x32xf32>
    %151 = vector.broadcast %149 : vector<16x1xf32> to vector<16x32xf32>
    %152 = vector.broadcast %150 : vector<1x32xf32> to vector<16x32xf32>
    %153 = arith.addf %151, %152 : vector<16x32xf32>
    %cst_42 = arith.constant 2.000000e-01 : f32
    %154 = vector.broadcast %cst_42 : f32 to vector<16x32xf32>
    %155 = arith.mulf %154, %153 : vector<16x32xf32>
    %156 = arith.maximumf %153, %155 : vector<16x32xf32>
    %157 = arith.addf %156, %1 : vector<16x32xf32>
    %cst_43 = arith.constant dense<0xFF800000> : vector<16xf32>
    %158 = vector.multi_reduction <maximumf>, %157, %cst_43 [1] : vector<16x32xf32> to vector<16xf32>
    %159 = vector.shape_cast %158 : vector<16xf32> to vector<16x1xf32>
    %160 = vector.broadcast %159 : vector<16x1xf32> to vector<16x32xf32>
    %161 = arith.subf %157, %160 : vector<16x32xf32>
    %162 = math.exp %161 : vector<16x32xf32>
    %cst_44 = arith.constant dense<0.000000e+00> : vector<16xf32>
    %163 = vector.multi_reduction <add>, %162, %cst_44 [1] : vector<16x32xf32> to vector<16xf32>
    %164 = vector.shape_cast %163 : vector<16xf32> to vector<16x1xf32>
    %165 = tpu.reciprocal %164 {approx = true} : vector<16x1xf32> -> vector<16x1xf32>
    %166 = vector.broadcast %165 : vector<16x1xf32> to vector<16x32xf32>
    %167 = arith.mulf %162, %166 : vector<16x32xf32>
    %168 = arith.truncf %167 : vector<16x32xf32> to vector<16x32xbf16>
    %c6 = arith.constant 6 : index
    %c0_45 = arith.constant 0 : index
    %c0_46 = arith.constant 0 : index
    %169 = vector.load %arg4[%c6, %c0_45, %c0_46] : memref<8x32x32xbf16, #tpu.memory_space<vmem>>, vector<1x32x32xbf16>
    %170 = vector.shape_cast %169 : vector<1x32x32xbf16> to vector<32x32xbf16>
    %cst_47 = arith.constant dense<0.000000e+00> : vector<16x32xf32>
    %171 = tpu.matmul %168, %170, %cst_47 {dimension_numbers = #tpu.dot_dimension_numbers<[1], [0], [0], [1], [0, 0, 1, 1], [], []>} : vector<16x32xbf16>, vector<32x32xbf16>, vector<16x32xf32> -> vector<16x32xf32>
    %172 = arith.addf %148, %171 : vector<16x32xf32>
    %173 = vector.extract_strided_slice %3 {offsets = [0, 7], sizes = [16, 1], strides = [1, 1]} : vector<16x8xf32> to vector<16x1xf32>
    %174 = vector.extract_strided_slice %2 {offsets = [7, 0], sizes = [1, 32], strides = [1, 1]} : vector<8x32xf32> to vector<1x32xf32>
    %175 = vector.broadcast %173 : vector<16x1xf32> to vector<16x32xf32>
    %176 = vector.broadcast %174 : vector<1x32xf32> to vector<16x32xf32>
    %177 = arith.addf %175, %176 : vector<16x32xf32>
    %cst_48 = arith.constant 2.000000e-01 : f32
    %178 = vector.broadcast %cst_48 : f32 to vector<16x32xf32>
    %179 = arith.mulf %178, %177 : vector<16x32xf32>
    %180 = arith.maximumf %177, %179 : vector<16x32xf32>
    %181 = arith.addf %180, %1 : vector<16x32xf32>
    %cst_49 = arith.constant dense<0xFF800000> : vector<16xf32>
    %182 = vector.multi_reduction <maximumf>, %181, %cst_49 [1] : vector<16x32xf32> to vector<16xf32>
    %183 = vector.shape_cast %182 : vector<16xf32> to vector<16x1xf32>
    %184 = vector.broadcast %183 : vector<16x1xf32> to vector<16x32xf32>
    %185 = arith.subf %181, %184 : vector<16x32xf32>
    %186 = math.exp %185 : vector<16x32xf32>
    %cst_50 = arith.constant dense<0.000000e+00> : vector<16xf32>
    %187 = vector.multi_reduction <add>, %186, %cst_50 [1] : vector<16x32xf32> to vector<16xf32>
    %188 = vector.shape_cast %187 : vector<16xf32> to vector<16x1xf32>
    %189 = tpu.reciprocal %188 {approx = true} : vector<16x1xf32> -> vector<16x1xf32>
    %190 = vector.broadcast %189 : vector<16x1xf32> to vector<16x32xf32>
    %191 = arith.mulf %186, %190 : vector<16x32xf32>
    %192 = arith.truncf %191 : vector<16x32xf32> to vector<16x32xbf16>
    %c7 = arith.constant 7 : index
    %c0_51 = arith.constant 0 : index
    %c0_52 = arith.constant 0 : index
    %193 = vector.load %arg4[%c7, %c0_51, %c0_52] : memref<8x32x32xbf16, #tpu.memory_space<vmem>>, vector<1x32x32xbf16>
    %194 = vector.shape_cast %193 : vector<1x32x32xbf16> to vector<32x32xbf16>
    %cst_53 = arith.constant dense<0.000000e+00> : vector<16x32xf32>
    %195 = tpu.matmul %192, %194, %cst_53 {dimension_numbers = #tpu.dot_dimension_numbers<[1], [0], [0], [1], [0, 0, 1, 1], [], []>} : vector<16x32xbf16>, vector<32x32xbf16>, vector<16x32xf32> -> vector<16x32xf32>
    %196 = arith.addf %172, %195 : vector<16x32xf32>
    %cst_54 = arith.constant 1.250000e-01 : f32
    %197 = vector.broadcast %cst_54 : f32 to vector<16x32xf32>
    %198 = arith.mulf %196, %197 : vector<16x32xf32>
    %c0_55 = arith.constant 0 : index
    %c0_56 = arith.constant 0 : index
    %199 = vector.load %arg5[%c0_55, %c0_56] : memref<1x32xf32, #tpu.memory_space<vmem>>, vector<1x32xf32>
    %200 = vector.broadcast %199 : vector<1x32xf32> to vector<16x32xf32>
    %201 = arith.addf %198, %200 : vector<16x32xf32>
    %cst_57 = arith.constant 0.000000e+00 : f32
    %202 = vector.broadcast %cst_57 : f32 to vector<16x32xf32>
    %203 = arith.maximumf %201, %202 : vector<16x32xf32>
    %c0_58 = arith.constant 0 : index
    %c0_59 = arith.constant 0 : index
    %204 = vector.load %arg6[%c0_58, %c0_59] : memref<16x32xf32, #tpu.memory_space<vmem>>, vector<16x32xf32>
    tpu.vector_store %arg6[%c0_58, %c0_59], %203 {strides = array<i32>} : memref<16x32xf32, #tpu.memory_space<vmem>>, vector<16x32xf32>,
    return
  }
  func.func @transform_0(%arg0: i32) -> (i32, i32) {
    %c0_i32 = arith.constant 0 : i32
    %c0_i32_0 = arith.constant 0 : i32
    %c0_i32_1 = arith.constant 0 : i32
    return %c0_i32, %c0_i32_0 : i32, i32
  }
  func.func @transform_1(%arg0: i32) -> (i32, i32) {
    %c0_i32 = arith.constant 0 : i32
    %c0_i32_0 = arith.constant 0 : i32
    return %arg0, %c0_i32 : i32, i32
  }
  func.func @transform_2(%arg0: i32) -> (i32, i32) {
    %c0_i32 = arith.constant 0 : i32
    %c0_i32_0 = arith.constant 0 : i32
    return %arg0, %c0_i32 : i32, i32
  }
  func.func @transform_3(%arg0: i32) -> (i32, i32, i32) {
    %c0_i32 = arith.constant 0 : i32
    %c0_i32_0 = arith.constant 0 : i32
    %c0_i32_1 = arith.constant 0 : i32
    %c0_i32_2 = arith.constant 0 : i32
    return %c0_i32, %c0_i32_0, %c0_i32_1 : i32, i32, i32
  }
  func.func @transform_4(%arg0: i32) -> (i32, i32) {
    %c0_i32 = arith.constant 0 : i32
    %c0_i32_0 = arith.constant 0 : i32
    %c0_i32_1 = arith.constant 0 : i32
    return %c0_i32, %c0_i32_0 : i32, i32
  }
  func.func @transform_5(%arg0: i32) -> (i32, i32) {
    %c0_i32 = arith.constant 0 : i32
    %c0_i32_0 = arith.constant 0 : i32
    return %arg0, %c0_i32 : i32, i32
  }
}

</mosaic_0001>

<bundles_post_ra>
// kernel: tpu_custom_call.1
= control target key start
LH: loop header
LB: loop body
LE: loop exit
PB: predicated region body
PF: predicated region fallthrough
CT: control target
= control target key end

     0   :  { %10 = vsyncpa [#allocation3], 0  ;;  %s1691_s0 = inlined_call_operand.vmem [shape: f32[8,32], index: 0, kind: input, shape index: {}]   ;;  %s1692_s1 = inlined_call_operand.vmem [shape: f32[32,8], index: 1, kind: input, shape index: {}]   ;;  %s1693_s2 = inlined_call_operand.vmem [shape: bf16[32,32], index: 2, kind: input, shape index: {}]   ;;  %s1694_s3 = inlined_call_operand.hbm [shape: bf16[8,32,32], index: 3, kind: input, shape index: {}]   ;;  %s1695_s4 = inlined_call_operand.vmem [shape: f32[1,32], index: 4, kind: input, shape index: {}]   ;;  %s1696_s5 = inlined_call_operand.hbm [shape: f32[32,32], index: 5, kind: output, shape index: {}]  }
   0x1   :  { %11 = vsyncpa [#allocation4], 0 }
   0x2   :  { %13 = vsyncpa [#allocation4 + $0x1], 0  ;;  %s1384_s18 = smov 0   ;;  %s1386_s19 = smov 0  }
   0x3   :  { %s1388_s20 = smov 0   ;;  %s1390_s21 = smov 0  }
   0x4 LB: > { %s1405_s22 = sadd.s32 4294967295, %s1339_s21   ;;  %s993_s23 = sadd.s32 4294967294, %s1339_s21   ;;  %s1339_s21 = sphi %s1390_s21, %s1702_s21   ;;  %s1335_s20 = sphi %s1388_s20, %s1701_s20   ;;  %s1331_s19 = sphi %s1386_s19, %s1700_s19   ;;  %s1327_s18 = sphi %s1384_s18, %s1699_s18  }
   0x5   : > { %s1409_s24 = sadd.s32 1, %s1339_s21   ;;  %s141_s25 = sadd.s32 1, %s1335_s20 }
   0x6   : > { %s138_s26 = ssub.s32 %s1339_s21, %s1409_s24  ;;  %p151_p0 = scmp.ne.s32.totalorder %s1335_s20, %s1331_s19 }
   0x7   : > { %p139_p1 = scmp.eq.s32.totalorder %s138_s26, 0  ;;  %p152_p2 = scmp.eq.s32.totalorder %s1405_s22, 1 }
   0x8   : > { %p157_p3 = scmp.ne.s32.totalorder %s1331_s19, %s1327_s18  ;;  %p158_p4 = scmp.eq.s32.totalorder %s993_s23, 1 }
   0x9   : > { %s1420_s27 = scalar_select %p139_p1, %s1335_s20, %s141_s25  }
   0xa   : > { %p1422_p5 = por %p152_p2, %p151_p0  ;;  %p1426_p6 = por %p158_p4, %p157_p3 }
   0xb   : > { %p994_p7 = scmp.ge.s32.totalorder %s1339_s21, 1  ;;  %p165_p8 = scmp.lt.s32.totalorder %s1339_s21, 3 }
   0xc   : > { %p1116_p9 = scmp.eq.s32.totalorder %s1405_s22, 0  ;;  %s179_s7 = sshll.u32 %s1694_s3, 4  ;;  %s180_s7 = int_to_ptr.hbm [resolvable:$true] %s179_s7 }
   0xd   : > { %p166_p10 = pnand %p994_p7, %p165_p8  ;;  %s1341_s8 = smov [#allocation2]  }
   0xe   : > { %s181_s9 = sshll.u32 %s1341_s8, 4  ;;  %s1342_s10 = smov 64   ;;  %s182_s9 = int_to_ptr.vmem [resolvable:$true] %s181_s9 }
   0xf   : > { %p1108_p11 = pneg %p166_p10  ;;  %s1343_s11 = smov 4  }
  0x10   : > { %218 = sbr.rel (%p166_p10) target bundleno = 609 (0x261), region = 40 }
  0x11   : > { %p1109_p12 = pnand %p1116_p9, %p1108_p11 }
  0x13   : > { %1111 = dma.hbm_to_vmem [thread:$0]  (!%p1109_p12), %s180_s7, 2048, %s182_s9, [#allocation3], %s1342_s10, %s1342_s10, %s1343_s11  }
  0x15   : > { %1318 = dma.done.wait (%p1116_p9), [#allocation3], 2048  }
  0x16   : > { %1320 = vsyncadd (%p1116_p9), [#allocation3], 4294965248  ;;  %s1000_s12 = sshll.u32 %s1405_s22, 1  ;;  %v1344_v0 = vmov 2   ;;  %v1345_v1 = vmov 0   ;;  %v1346_v4 = vmov 1  }
  0x17   : > { %1166 = vset.pattern.permute.xlu2 %v1344_v0  ;;  %1165 = vset.pattern.permute.xlu1 %v1344_v0  ;;  %p253_p13 = scmp.lt.s32.totalorder %s1000_s12, 3  ;;  %v1347_v5 = vmov 4   ;;  %v1348_v6 = vmov 3   ;;  %v1349_v7 = vmov 7   ;;  %v1350_v8 = vmov 6   ;;  %v1453_v11 = vld [vmem:[%s1691_s0] sm:$0xff] }
  0x18   : > { %1164 = vset.pattern.permute.xlu0 %v1345_v1  ;;  %v1351_v9 = vmov 5   ;;  %v328_v12 = vperm.slane %v1453_v11, 1  ;;  %vm292_vm0 = vcmask 261120   ;;  %v431_v22 = vperm.slane %v1453_v11, 2  ;;  %s249_s7 = sand.u32 1, %s1331_s19   ;;  %s1097_s11 = sshll.u32 %s1405_s22, 4 }
  0x19   : > { %s1704_s12 = smov (!%p253_p13, %s1000_s12), 3  ;;  %v283_v23 = vperm.slane %v1453_v11, 0  ;;  %v507_v35 = vperm.slane %v1453_v11, 3  ;;  %v583_v37 = vperm.slane %v1453_v11, 4  ;;  %s999_s10 = sshll.u32 %s249_s7, 4 }
  0x1a   : > { %s1001_s13 = sshll.u32 %s1704_s12, 3  ;;  %s1003_s17 = sshll.u32 %s1704_s12, 2 }
  0x1b   : > { %s256_s16 = scalar_lea.vmem %s1692_s1, %s1001_s13  ;;  %s262_s6 = scalar_lea.vmem %s1693_s2, %s1003_s17 }
  0x1c   : > { %v272_v2 = vld [vmem:[%s256_s16 + $0x8] sm:$0xff]  ;;  %v271_v3 = vld [vmem:[%s256_s16] sm:$0xff]  ;;  %s903_s14 = scalar_lea.hbm %s1696_s5, %s1097_s11  ;;  %s251_s15 = scalar_lea.vmem [#allocation5], %s999_s10 }
  0x1d   : > { %428 = vperm.xlu2 %1166, %v272_v2   ;;  %424 = vperm.xlu1 %1165, %v271_v3   ;;  %v1099_v13 = vld [vmem:[%s262_s6] sm:$0xff]   ;;  %s904_s16 = sshll.u32 %s251_s15, 4  ;;  %s906_s17 = sshll.u32 %s903_s14, 4  ;;  %s905_s16 = int_to_ptr.vmem [resolvable:$true] %s904_s16  ;;  %s907_s17 = int_to_ptr.hbm [resolvable:$true] %s906_s17 }
  0x1e   : > { %275 = vperm.xlu0 %1164, %v271_v3   ;;  %v1459_v16 = vunpack.c.l.bf16 %v1099_v13  ;;  %v1476_v39 = vunpack.c.h.bf16 %v1099_v13  ;;  %s892_s22 = scalar_lea.sflag [#allocation4], %s249_s7  ;;  %s1287_s23 = sshra.s32 %s907_s17, 4  ;;  %s1288_s23 = int_to_ptr.hbm [resolvable:$true] %s1287_s23 }
  0x1f   : > { %s1289_s25 = scalar_lea.hbm %s1288_s23, 16  ;;  %s1293_s6 = scalar_lea.hbm %s1696_s5, 32 }
  0x20   : > { %p1290_p0 = scmp.ne.s32.totalorder %s1288_s23, %s1289_s25  ;;  %p1294_p3 = scmp.lt.s32.totalorder %s1288_s23, %s1696_s5 }
  0x21   : > { %p1295_p4 = scmp.lt.s32.totalorder %s1293_s6, %s1289_s25 }
  0x22   : > { %p1291_p1 = pnand %p1290_p0, %p1422_p5 }
  0x23   : > { %p1296_p7 = por %p1295_p4, %p1294_p3 }
  0x24   : > { %p1292_p2 = pneg %p1291_p1 }
  0x25   : > { %1167 = vset.pattern.permute.xlu2 %v1346_v4  ;;  %1172 = vset.pattern.permute.xlu1 %v1347_v5 }
  0x26   : > { %280 = vperm.xlu0 %1164, %v272_v2   ;;  %321 = vperm.xlu2 %1167, %v271_v3   ;;  %p1297_p8 = pnand %p1296_p7, %p1292_p2 }
  0x27   : > { %576 = vperm.xlu1 %1172, %v271_v3  }
  0x2e   : > { %1168 = vset.pattern.permute.xlu0 %v1346_v4  ;;  %1169 = vset.pattern.permute.xlu2 %v1348_v6  ;;  %v735_v4 = vperm.slane %v1453_v11, 6 }
  0x2f   : > { %325 = vperm.xlu0 %1168, %v272_v2   ;;  %500 = vperm.xlu2 %1169, %v271_v3  }
  0x30   : > { %1174 = vset.pattern.permute.xlu1 %v1349_v7 }
  0x31   : > { %804 = vperm.xlu1 %1174, %v271_v3  }
  0x37   : > { %1170 = vset.pattern.permute.xlu0 %v1350_v8  ;;  %504 = vperm.xlu2 %1169, %v272_v2  }
  0x38   : > { %728 = vperm.xlu0 %1170, %v271_v3  }
  0x39   : > { %1177 = vset.pattern.permute.xlu1 %v1351_v9 }
  0x3a   : > { %656 = vperm.xlu1 %1177, %v272_v2  }
  0x3f   : > { %1171 = vset.pattern.permute.xlu2 %v1350_v8 }
  0x40   : > { %1175 = vset.pattern.permute.xlu0 %v1349_v7  ;;  %732 = vperm.xlu2 %1171, %v272_v2  }
  0x41   : > { %808 = vperm.xlu0 %1175, %v272_v2  }
  0x48   : > { %1173 = vset.pattern.permute.xlu2 %v1347_v5 }
  0x49   : > { %580 = vperm.xlu2 %1173, %v272_v2  }
  0x51   : > { %1176 = vset.pattern.permute.xlu2 %v1351_v9 }
  0x52   : > { %652 = vperm.xlu2 %1176, %v271_v3  }
  0x77   : > { %v429_v10 = vpop.permute.xlu2 %428 }
  0x78   : > { %v433_v27 = vadd.f32 %v431_v22, %v429_v10 }
  0x7a   : > { %v435_v33 = vmul.f32 0.2, %v433_v27 }
  0x7c   : > { %v437_v42 = vmax.f32 %v433_v27, %v435_v33 }
  0x7e   : > { %v1483_v53 = vadd.f32 %v1476_v39, %v437_v42 }
  0x80   : > { %v322_v14 = vpop.permute.xlu2 %321  ;;  %v443_v59 = vsel %vm292_vm0, %v1483_v53, -inf }
  0x81   : > { %v329_v15 = vadd.f32 %v328_v12, %v322_v14 }
  0x83   : > { %v331_v17 = vmul.f32 0.2, %v329_v15 }
  0x85   : > { %v333_v18 = vmax.f32 %v329_v15, %v331_v17 }
  0x87   : > { %v1462_v19 = vadd.f32 %v1459_v16, %v333_v18 }
  0x89   : > { %v337_v20 = vsel %vm292_vm0, %v1462_v19, -inf  ;;  %v501_v21 = vpop.permute.xlu2 %500 }
  0x8a   : > { %338 = vmax.xlane.f32.xlu0 %v337_v20  ;;  %v508_v43 = vadd.f32 %v507_v35, %v501_v21  ;;  %v659_v20 = vperm.slane %v1453_v11, 5 }
  0x8c   : > { %v510_v51 = vmul.f32 0.2, %v508_v43 }
  0x8e   : > { %v512_v56 = vmax.f32 %v508_v43, %v510_v51 }
  0x8f   : > { %v425_v24 = vpop.permute.xlu1 %424 }
  0x90   : > { %v432_v25 = vadd.f32 %v431_v22, %v425_v24  ;;  %v276_v26 = vpop.permute.xlu0 %275  ;;  %v1496_v1 = vadd.f32 %v1459_v16, %v512_v56 }
  0x91   : > { %v284_v28 = vadd.f32 %v283_v23, %v276_v26  ;;  %v505_v30 = vpop.permute.xlu2 %504 }
  0x92   : > { %v434_v29 = vmul.f32 0.2, %v432_v25  ;;  %v509_v60 = vadd.f32 %v507_v35, %v505_v30  ;;  %v516_v7 = vsel %vm292_vm0, %v1496_v1, -inf }
  0x93   : > { %v286_v31 = vmul.f32 0.2, %v284_v28 }
  0x94   : > { %v436_v32 = vmax.f32 %v432_v25, %v434_v29  ;;  %v511_v2 = vmul.f32 0.2, %v509_v60  ;;  %v811_v25 = vperm.slane %v1453_v11, 7 }
  0x95   : > { %v288_v34 = vmax.f32 %v284_v28, %v286_v31 }
  0x96   : > { %v1470_v36 = vadd.f32 %v1459_v16, %v436_v32  ;;  %v513_v9 = vmax.f32 %v509_v60, %v511_v2 }
  0x97   : > { %v1474_v38 = vadd.f32 %v1459_v16, %v288_v34 }
  0x98   : > { %v281_v40 = vpop.permute.xlu0 %280  ;;  %v440_v41 = vsel %vm292_vm0, %v1470_v36, -inf  ;;  %v1510_v22 = vadd.f32 %v1476_v39, %v513_v9 }
  0x99   : > { %v285_v44 = vadd.f32 %v283_v23, %v281_v40  ;;  %441 = vmax.xlane.f32.xlu2 %v440_v41  ;;  %v293_v45 = vsel %vm292_vm0, %v1474_v38, -inf  ;;  %v577_v46 = vpop.permute.xlu1 %576 }
  0x9a   : > { %294 = vmax.xlane.f32.xlu1 %v293_v45  ;;  %v584_v47 = vadd.f32 %v583_v37, %v577_v46  ;;  %v733_v48 = vpop.permute.xlu2 %732  ;;  %v519_v30 = vsel %vm292_vm0, %v1510_v22, -inf }
  0x9b   : > { %v287_v49 = vmul.f32 0.2, %v285_v44  ;;  %v737_v10 = vadd.f32 %v735_v4, %v733_v48 }
  0x9c   : > { %v586_v50 = vmul.f32 0.2, %v584_v47 }
  0x9d   : > { %v289_v52 = vmax.f32 %v285_v44, %v287_v49  ;;  %v739_v21 = vmul.f32 0.2, %v737_v10 }
  0x9e   : > { %v588_v54 = vmax.f32 %v584_v47, %v586_v50 }
  0x9f   : > { %v1486_v55 = vadd.f32 %v1476_v39, %v289_v52  ;;  %v741_v29 = vmax.f32 %v737_v10, %v739_v21 }
  0xa0   : > { %v1493_v62 = vadd.f32 %v1459_v16, %v588_v54 }
  0xa1   : > { %v326_v57 = vpop.permute.xlu0 %325  ;;  %v296_v58 = vsel %vm292_vm0, %v1486_v55, -inf  ;;  %v1524_v41 = vadd.f32 %v1476_v39, %v741_v29 }
  0xa2   : > { %v330_v61 = vadd.f32 %v328_v12, %v326_v57  ;;  %297 = vmax.xlane.f32.xlu0 %v296_v58  ;;  %444 = vmax.xlane.f32.xlu1 %v443_v59  ;;  %v592_v5 = vsel %vm292_vm0, %v1493_v62, -inf }
  0xa3   : > { %v581_v0 = vpop.permute.xlu2 %580  ;;  %v805_v18 = vpop.permute.xlu1 %804  ;;  %v747_v47 = vsel %vm292_vm0, %v1524_v41, -inf }
  0xa4   : > { %v332_v63 = vmul.f32 0.2, %v330_v61  ;;  %v585_v8 = vadd.f32 %v583_v37, %v581_v0  ;;  %v812_v31 = vadd.f32 %v811_v25, %v805_v18 }
  0xa6   : > { %v334_v3 = vmax.f32 %v330_v61, %v332_v63  ;;  %v587_v17 = vmul.f32 0.2, %v585_v8  ;;  %v814_v40 = vmul.f32 0.2, %v812_v31 }
  0xa8   : > { %v1502_v6 = vadd.f32 %v1476_v39, %v334_v3  ;;  %v589_v26 = vmax.f32 %v585_v8, %v587_v17  ;;  %v816_v46 = vmax.f32 %v812_v31, %v814_v40 }
  0xaa   : > { %v729_v12 = vpop.permute.xlu0 %728  ;;  %593 = vmax.xlane.f32.xlu0 %v592_v5  ;;  %517 = vmax.xlane.f32.xlu1 %v516_v7  ;;  %v340_v13 = vsel %vm292_vm0, %v1502_v6, -inf  ;;  %v1521_v11 = vadd.f32 %v1476_v39, %v589_v26  ;;  %v1539_v54 = vadd.f32 %v1459_v16, %v816_v46 }
  0xab   : > { %v736_v14 = vadd.f32 %v735_v4, %v729_v12  ;;  %341 = vmax.xlane.f32.xlu2 %v340_v13 }
  0xac   : > { %v653_v23 = vpop.permute.xlu2 %652  ;;  %v657_v42 = vpop.permute.xlu1 %656  ;;  %v595_v45 = vsel %vm292_vm0, %v1521_v11, -inf  ;;  %v820_v58 = vsel %vm292_vm0, %v1539_v54, -inf }
  0xad   : > { %v738_v15 = vmul.f32 0.2, %v736_v14  ;;  %v660_v28 = vadd.f32 %v659_v20, %v653_v23  ;;  %v661_v49 = vadd.f32 %v659_v20, %v657_v42 }
  0xaf   : > { %v740_v24 = vmax.f32 %v736_v14, %v738_v15  ;;  %v662_v35 = vmul.f32 0.2, %v660_v28  ;;  %v663_v52 = vmul.f32 0.2, %v661_v49 }
  0xb1   : > { %v1514_v27 = vadd.f32 %v1459_v16, %v740_v24  ;;  %v664_v44 = vmax.f32 %v660_v28, %v662_v35  ;;  %v665_v57 = vmax.f32 %v661_v49, %v663_v52 }
  0xb3   : > { %v809_v32 = vpop.permute.xlu0 %808  ;;  %520 = vmax.xlane.f32.xlu2 %v519_v30  ;;  %v744_v33 = vsel %vm292_vm0, %v1514_v27, -inf  ;;  %v1536_v51 = vadd.f32 %v1459_v16, %v664_v44  ;;  %v1546_v59 = vadd.f32 %v1476_v39, %v665_v57 }
  0xb4   : > { %v813_v34 = vadd.f32 %v811_v25, %v809_v32  ;;  %745 = vmax.xlane.f32.xlu1 %v744_v33 }
  0xb5   : > { %v668_v56 = vsel %vm292_vm0, %v1536_v51, -inf  ;;  %v671_v60 = vsel %vm292_vm0, %v1546_v59, -inf }
  0xb6   : > { %v815_v37 = vmul.f32 0.2, %v813_v34 }
  0xb8   : > { %v817_v43 = vmax.f32 %v813_v34, %v815_v37 }
  0xba   : > { %v1531_v48 = vadd.f32 %v1476_v39, %v817_v43 }
  0xbb   : > { %748 = vmax.xlane.f32.xlu2 %v747_v47 }
  0xbc   : > { %596 = vmax.xlane.f32.xlu1 %v595_v45  ;;  %v823_v50 = vsel %vm292_vm0, %v1531_v48, -inf }
  0xbd   : > { %824 = vmax.xlane.f32.xlu0 %v823_v50 }
  0xc3   : > { %821 = vmax.xlane.f32.xlu2 %v820_v58 }
  0xc4   : > { %669 = vmax.xlane.f32.xlu1 %v668_v56 }
  0xcb   : > { %672 = vmax.xlane.f32.xlu2 %v671_v60 }
  0xfd   : > { %v339_v61 = vpop.xlane.xlu0 %338 }
  0xfe   : > { %v343_v16 = vsub.f32 %v1462_v19, %v339_v61 }
 0x100   : > { %v345_v63 = vmul.f32 1.442695, %v343_v16 }
 0x102   : > { %1179 = vpow2.f32 %v345_v63 }
 0x108   : > { %v1551_v0 = vpop.eup %1179 }
 0x109   : > { %v349_v2 = vsel %vm292_vm0, %v1551_v0, 0.0 }
 0x10a   : > { %350 = vadd.xlane.f32.xlu2 %v349_v2 }
 0x10c   : > { %v442_v3 = vpop.xlane.xlu2 %441 }
 0x10d   : > { %v446_v4 = vsub.f32 %v1470_v36, %v442_v3  ;;  %v295_v39 = vpop.xlane.xlu1 %294 }
 0x10e   : > { %v299_v21 = vsub.f32 %v1474_v38, %v295_v39 }
 0x10f   : > { %v448_v5 = vmul.f32 1.442695, %v446_v4 }
 0x111   : > { %1181 = vpow2.f32 %v448_v5 }
 0x115   : > { %v445_v7 = vpop.xlane.xlu1 %444  ;;  %v298_v12 = vpop.xlane.xlu0 %297 }
 0x116   : > { %v447_v8 = vsub.f32 %v1483_v53, %v445_v7  ;;  %v300_v53 = vsub.f32 %v1486_v55, %v298_v12 }
 0x117   : > { %v1557_v9 = vpop.eup %1181 }
 0x118   : > { %v450_v19 = vmul.f32 1.442695, %v447_v8  ;;  %v452_v10 = vsel %vm292_vm0, %v1557_v9, 0.0  ;;  %v303_v24 = vmul.f32 1.442695, %v300_v53  ;;  %v1084_v53 = vld [vmem:[#allocation2 + $0x18] sm:$0xff] }
 0x119   : > { %453 = vadd.xlane.f32.xlu0 %v452_v10  ;;  %386 = vmatpush.bf16.msra.mxu0 %v1084_v53 }
 0x11a   : > { %1183 = vpow2.f32 %v450_v19 }
 0x11d   : > { %v518_v13 = vpop.xlane.xlu1 %517  ;;  %v594_v25 = vpop.xlane.xlu0 %593 }
 0x11e   : > { %v522_v14 = vsub.f32 %v1496_v1, %v518_v13  ;;  %v342_v15 = vpop.xlane.xlu2 %341  ;;  %v301_v1 = vmul.f32 1.442695, %v299_v21  ;;  %v598_v29 = vsub.f32 %v1493_v62, %v594_v25  ;;  %v1082_v21 = vld [vmem:[#allocation2 + $0x8] sm:$0xff]  ;;  %v1087_v25 = vld [vmem:[#allocation2 + $0x30] sm:$0xff] }
 0x11f   : > { %v344_v36 = vsub.f32 %v1502_v6, %v342_v15  ;;  %415 = vmatpush.bf16.msra.mxu1 %v1082_v21 }
 0x120   : > { %v524_v17 = vmul.f32 1.442695, %v522_v14  ;;  %v1563_v18 = vpop.eup %1183  ;;  %v600_v33 = vmul.f32 1.442695, %v598_v29 }
 0x121   : > { %v347_v20 = vmul.f32 1.442695, %v344_v36  ;;  %v455_v23 = vsel %vm292_vm0, %v1563_v18, 0.0  ;;  %v1086_v36 = vld [vmem:[#allocation2 + $0x28] sm:$0xff] }
 0x122   : > { %1185 = vpow2.f32 %v524_v17  ;;  %456 = vadd.xlane.f32.xlu1 %v455_v23  ;;  %489 = vmatpush.bf16.msra.mxu2 %v1086_v36  ;;  %v1085_v17 = vld [vmem:[#allocation2 + $0x20] sm:$0xff]  ;;  %v1088_v23 = vld [vmem:[#allocation2 + $0x38] sm:$0xff] }
 0x123   : > { %1187 = vpow2.f32 %v347_v20  ;;  %v1083_v20 = vld [vmem:[#allocation2 + $0x10] sm:$0xff]  ;;  %565 = vmatpush.bf16.msra.mxu3 %v1088_v23 }
 0x124   : > { %1189 = vpow2.f32 %v303_v24  ;;  %387 = vmatpush.bf16.msra.mxu0 %v1083_v20  ;;  %v1081_v24 = vld [vmem:[#allocation2] sm:$0xff] }
 0x125   : > { %1191 = vpow2.f32 %v301_v1  ;;  %416 = vmatpush.bf16.msra.mxu1 %v1081_v24 }
 0x126   : > { %v521_v26 = vpop.xlane.xlu2 %520  ;;  %490 = vmatpush.bf16.msra.mxu2 %v1085_v17 }
 0x127   : > { %v523_v6 = vsub.f32 %v1510_v22, %v521_v26  ;;  %v746_v28 = vpop.xlane.xlu1 %745  ;;  %566 = vmatpush.bf16.msra.mxu3 %v1087_v25  ;;  %v1094_v26 = vld [vmem:[#allocation2 + $0x68] sm:$0xff] }
 0x128   : > { %v1571_v30 = vpop.eup %1185  ;;  %v750_v38 = vsub.f32 %v1514_v27, %v746_v28  ;;  %v1093_v28 = vld [vmem:[#allocation2 + $0x60] sm:$0xff] }
 0x129   : > { %v526_v55 = vmul.f32 1.442695, %v523_v6  ;;  %v1574_v31 = vpop.eup %1187  ;;  %v528_v32 = vsel %vm292_vm0, %v1571_v30, 0.0 }
 0x12a   : > { %529 = vadd.xlane.f32.xlu1 %v528_v32  ;;  %v352_v22 = vsel %vm292_vm0, %v1574_v31, 0.0  ;;  %v752_v62 = vmul.f32 1.442695, %v750_v38  ;;  %v1580_v35 = vpop.eup %1189  ;;  %793 = vmatpush.bf16.msrb.mxu2 %v1094_v26  ;;  %v1090_v38 = vld [vmem:[#allocation2 + $0x48] sm:$0xff]  ;;  %v1096_v32 = vld [vmem:[#allocation2 + $0x78] sm:$0xff] }
 0x12b   : > { %1193 = vpow2.f32 %v526_v55  ;;  %353 = vadd.xlane.f32.xlu0 %v352_v22  ;;  %v1583_v40 = vpop.eup %1191  ;;  %v308_v47 = vsel %vm292_vm0, %v1580_v35, 0.0  ;;  %641 = vmatpush.bf16.msrb.mxu0 %v1090_v38 }
 0x12c   : > { %1195 = vpow2.f32 %v600_v33  ;;  %869 = vmatpush.bf16.msrb.mxu3 %v1096_v32 }
 0x12d   : > { %1197 = vpow2.f32 %v752_v62 }
 0x12e   : > { %v749_v34 = vpop.xlane.xlu2 %748  ;;  %794 = vmatpush.bf16.msrb.mxu2 %v1093_v28 }
 0x12f   : > { %v751_v37 = vsub.f32 %v1524_v41, %v749_v34  ;;  %v597_v27 = vpop.xlane.xlu1 %596  ;;  %v305_v41 = vsel %vm292_vm0, %v1583_v40, 0.0 }
 0x130   : > { %v599_v42 = vsub.f32 %v1521_v11, %v597_v27  ;;  %v825_v43 = vpop.xlane.xlu0 %824  ;;  %v1089_v27 = vld [vmem:[#allocation2 + $0x40] sm:$0xff] }
 0x131   : > { %v1586_v44 = vpop.eup %1193  ;;  %v754_v45 = vmul.f32 1.442695, %v751_v37  ;;  %v827_v46 = vsub.f32 %v1531_v48, %v825_v43  ;;  %642 = vmatpush.bf16.msrb.mxu0 %v1089_v27 }
 0x132   : > { %v531_v49 = vsel %vm292_vm0, %v1586_v44, 0.0  ;;  %309 = vadd.xlane.f32.xlu1 %v308_v47  ;;  %v602_v11 = vmul.f32 1.442695, %v599_v42  ;;  %v1595_v52 = vpop.eup %1195  ;;  %v1095_v42 = vld [vmem:[#allocation2 + $0x70] sm:$0xff] }
 0x133   : > { %1199 = vpow2.f32 %v754_v45  ;;  %532 = vadd.xlane.f32.xlu2 %v531_v49  ;;  %306 = vadd.xlane.f32.xlu0 %v305_v41  ;;  %v830_v50 = vmul.f32 1.442695, %v827_v46  ;;  %v1597_v57 = vpop.eup %1197  ;;  %v604_v63 = vsel %vm292_vm0, %v1595_v52, 0.0  ;;  %v1092_v45 = vld [vmem:[#allocation2 + $0x58] sm:$0xff] }
 0x134   : > { %1201 = vpow2.f32 %v602_v11  ;;  %v756_v3 = vsel %vm292_vm0, %v1597_v57, 0.0  ;;  %870 = vmatpush.bf16.msrb.mxu3 %v1095_v42  ;;  %717 = vmatpush.bf16.msrb.mxu1 %v1092_v45 }
 0x135   : > { %1203 = vpow2.f32 %v830_v50  ;;  %v1091_v50 = vld [vmem:[#allocation2 + $0x50] sm:$0xff] }
 0x136   : > { %v822_v56 = vpop.xlane.xlu2 %821 }
 0x137   : > { %v826_v48 = vsub.f32 %v1539_v54, %v822_v56  ;;  %v670_v58 = vpop.xlane.xlu1 %669 }
 0x138   : > { %v674_v16 = vsub.f32 %v1536_v51, %v670_v58  ;;  %718 = vmatpush.bf16.msrb.mxu1 %v1091_v50 }
 0x139   : > { %v1600_v60 = vpop.eup %1199  ;;  %v828_v61 = vmul.f32 1.442695, %v826_v48 }
 0x13a   : > { %v759_v2 = vsel %vm292_vm0, %v1600_v60, 0.0  ;;  %605 = vadd.xlane.f32.xlu1 %v604_v63  ;;  %v676_v54 = vmul.f32 1.442695, %v674_v16  ;;  %v1609_v4 = vpop.eup %1201 }
 0x13b   : > { %1205 = vpow2.f32 %v828_v61  ;;  %757 = vadd.xlane.f32.xlu2 %v756_v3  ;;  %760 = vadd.xlane.f32.xlu0 %v759_v2  ;;  %v1611_v5 = vpop.eup %1203  ;;  %v607_v12 = vsel %vm292_vm0, %v1609_v4, 0.0 }
 0x13c   : > { %1207 = vpow2.f32 %v676_v54  ;;  %v835_v19 = vsel %vm292_vm0, %v1611_v5, 0.0 }
 0x13e   : > { %v673_v39 = vpop.xlane.xlu2 %672 }
 0x13f   : > { %v675_v51 = vsub.f32 %v1546_v59, %v673_v39 }
 0x141   : > { %v1614_v7 = vpop.eup %1205  ;;  %v678_v8 = vmul.f32 1.442695, %v675_v51 }
 0x142   : > { %v832_v10 = vsel %vm292_vm0, %v1614_v7, 0.0  ;;  %836 = vadd.xlane.f32.xlu1 %v835_v19  ;;  %v1622_v13 = vpop.eup %1207 }
 0x143   : > { %1209 = vpow2.f32 %v678_v8  ;;  %608 = vadd.xlane.f32.xlu2 %v607_v12  ;;  %833 = vadd.xlane.f32.xlu0 %v832_v10  ;;  %v680_v15 = vsel %vm292_vm0, %v1622_v13, 0.0 }
 0x149   : > { %v1624_v59 = vpop.eup %1209 }
 0x14a   : > { %v683_v14 = vsel %vm292_vm0, %v1624_v59, 0.0 }
 0x14b   : > { %681 = vadd.xlane.f32.xlu2 %v680_v15  ;;  %684 = vadd.xlane.f32.xlu0 %v683_v14 }
 0x17d   : > { %v351_v55 = vpop.xlane.xlu2 %350 }
 0x18c   : > { %v454_v1 = vpop.xlane.xlu0 %453 }
 0x18d   : > { %1211 = vrcp.f32 %v454_v1 }
 0x193   : > { %v1212_v29 = vpop.eup %1211 }
 0x194   : > { %v460_v62 = vmul.f32 %v1212_v29, %v1557_v9 }
 0x195   : > { %v457_v6 = vpop.xlane.xlu1 %456 }
 0x196   : > { %1213 = vrcp.f32 %v457_v6 }
 0x197   : > { %1215 = vrcp.f32 %v351_v55 }
 0x19c   : > { %v1214_v22 = vpop.eup %1213 }
 0x19d   : > { %v530_v33 = vpop.xlane.xlu1 %529  ;;  %v461_v34 = vmul.f32 %v1214_v22, %v1563_v18  ;;  %v1216_v46 = vpop.eup %1215 }
 0x19e   : > { %v354_v37 = vpop.xlane.xlu0 %353  ;;  %v357_v18 = vmul.f32 %v1216_v46, %v1551_v0 }
 0x19f   : > { %1217 = vrcp.f32 %v354_v37  ;;  %v462_v43 = vpack.c.bf16 %v461_v34, %v460_v62 }
 0x1a0   : > { %1219 = vrcp.f32 %v530_v33 }
 0x1a1   : > { %1030 = vmatmul.msk.bf16.vlgmr.msra.gmra.mxu2 %vm292_vm0, %v462_v43 }
 0x1a5   : > { %v1218_v47 = vpop.eup %1217  ;;  %v310_v49 = vpop.xlane.xlu1 %309 }
 0x1a6   : > { %v533_v41 = vpop.xlane.xlu2 %532  ;;  %1221 = vrcp.f32 %v310_v49  ;;  %v307_v9 = vpop.xlane.xlu0 %306  ;;  %v358_v11 = vmul.f32 %v1218_v47, %v1574_v31 }
 0x1a7   : > { %1223 = vrcp.f32 %v533_v41  ;;  %v1220_v48 = vpop.eup %1219 }
 0x1a8   : > { %1225 = vrcp.f32 %v307_v9  ;;  %v359_v56 = vpack.c.bf16 %v358_v11, %v357_v18  ;;  %v536_v0 = vmul.f32 %v1220_v48, %v1571_v30  ;;  %v1178_v11 = vld [vmem:[%s1695_s4] ss:$0 sm:$0xff] }
 0x1aa   : > { %1012 = vmatmul.msk.bf16.vlgmr.msra.gmra.mxu0 %vm292_vm0, %v359_v56 }
 0x1ac   : > { %v1222_v58 = vpop.eup %1221 }
 0x1ad   : > { %v1224_v61 = vpop.eup %1223  ;;  %v606_v16 = vpop.xlane.xlu1 %605  ;;  %v314_v2 = vmul.f32 %v1222_v58, %v1580_v35 }
 0x1ae   : > { %v758_v63 = vpop.xlane.xlu2 %757  ;;  %v1226_v3 = vpop.eup %1225  ;;  %v537_v31 = vmul.f32 %v1224_v61, %v1586_v44 }
 0x1af   : > { %v761_v54 = vpop.xlane.xlu0 %760  ;;  %v313_v39 = vmul.f32 %v1226_v3, %v1583_v40 }
 0x1b0   : > { %1227 = vrcp.f32 %v761_v54  ;;  %v538_v51 = vpack.c.bf16 %v537_v31, %v536_v0 }
 0x1b1   : > { %1229 = vrcp.f32 %v758_v63  ;;  %v315_v8 = vpack.c.bf16 %v314_v2, %v313_v39 }
 0x1b2   : > { %1039 = vmatmul.msk.bf16.vlgmr.msra.gmra.mxu3 %vm292_vm0, %v538_v51  ;;  %1231 = vrcp.f32 %v606_v16 }
 0x1b3   : > { %1021 = vmatmul.msk.bf16.vlgmr.msra.gmra.mxu1 %vm292_vm0, %v315_v8 }
 0x1b5   : > { %v837_v10 = vpop.xlane.xlu1 %836 }
 0x1b6   : > { %v1228_v19 = vpop.eup %1227  ;;  %v609_v35 = vpop.xlane.xlu2 %608  ;;  %1233 = vrcp.f32 %v837_v10 }
 0x1b7   : > { %v1230_v12 = vpop.eup %1229  ;;  %v765_v14 = vmul.f32 %v1228_v19, %v1600_v60  ;;  %v834_v30 = vpop.xlane.xlu0 %833 }
 0x1b8   : > { %v764_v44 = vmul.f32 %v1230_v12, %v1597_v57  ;;  %1235 = vrcp.f32 %v834_v30  ;;  %v1232_v15 = vpop.eup %1231 }
 0x1b9   : > { %1237 = vrcp.f32 %v609_v35  ;;  %v612_v60 = vmul.f32 %v1232_v15, %v1595_v52 }
 0x1ba   : > { %v766_v40 = vpack.c.bf16 %v765_v14, %v764_v44 }
 0x1bc   : > { %1066 = vmatmul.msk.bf16.vlgmr.msrb.gmra.mxu2 %vm292_vm0, %v766_v40  ;;  %v1234_v36 = vpop.eup %1233 }
 0x1bd   : > { %v841_v53 = vmul.f32 %v1234_v36, %v1611_v5 }
 0x1be   : > { %v1236_v17 = vpop.eup %1235  ;;  %v682_v20 = vpop.xlane.xlu2 %681 }
 0x1bf   : > { %v1238_v21 = vpop.eup %1237  ;;  %v840_v23 = vmul.f32 %v1236_v17, %v1614_v7  ;;  %v685_v24 = vpop.xlane.xlu0 %684  ;;  %1239 = vrcp.f32 %v682_v20 }
 0x1c0   : > { %v613_v57 = vmul.f32 %v1238_v21, %v1609_v4  ;;  %1241 = vrcp.f32 %v685_v24 }
 0x1c1   : > { %v842_v25 = vpack.c.bf16 %v841_v53, %v840_v23 }
 0x1c2   : > { %v614_v1 = vpack.c.bf16 %v613_v57, %v612_v60 }
 0x1c3   : > { %1075 = vmatmul.msk.bf16.vlgmr.msrb.gmra.mxu3 %vm292_vm0, %v842_v25 }
 0x1c4   : > { %1048 = vmatmul.msk.bf16.vlgmr.msrb.gmra.mxu0 %vm292_vm0, %v614_v1 }
 0x1c5   : > { %v1240_v26 = vpop.eup %1239 }
 0x1c6   : > { %v1242_v6 = vpop.eup %1241  ;;  %v688_v5 = vmul.f32 %v1240_v26, %v1622_v13 }
 0x1c7   : > { %v689_v28 = vmul.f32 %v1242_v6, %v1624_v59 }
 0x1c9   : > { %v690_v7 = vpack.c.bf16 %v689_v28, %v688_v5 }
 0x1cb   : > { %1057 = vmatmul.msk.bf16.vlgmr.msrb.gmra.mxu1 %vm292_vm0, %v690_v7 }
 0x224   : > { %v492_v52 = vpop.f32.mrf.mxu2 }
 0x227   : > { %v389_v29 = vpop.f32.mrf.mxu0 }
 0x22c   : > { %v494_v32 = vpop.f32.mrf.mxu2 }
 0x22f   : > { %v391_v38 = vpop.f32.mrf.mxu0 }
 0x230   : > { %v418_v55 = vpop.f32.mrf.mxu1 }
 0x231   : > { %v419_v22 = vadd.f32 %v418_v55, %v389_v29 }
 0x233   : > { %v497_v37 = vadd.f32 %v492_v52, %v419_v22 }
 0x235   : > { %v568_v4 = vpop.f32.mrf.mxu3 }
 0x236   : > { %v573_v27 = vadd.f32 %v568_v4, %v497_v37 }
 0x238   : > { %v420_v33 = vpop.f32.mrf.mxu1 }
 0x239   : > { %v421_v42 = vadd.f32 %v420_v33, %v391_v38 }
 0x23b   : > { %v498_v47 = vadd.f32 %v494_v32, %v421_v42 }
 0x23d   : > { %v570_v62 = vpop.f32.mrf.mxu3 }
 0x23e   : > { %v574_v9 = vadd.f32 %v570_v62, %v498_v47 }
 0x23f   : > { %v796_v43 = vpop.f32.mrf.mxu2 }
 0x241   : > { %v644_v34 = vpop.f32.mrf.mxu0 }
 0x242   : > { %v649_v13 = vadd.f32 %v644_v34, %v573_v27 }
 0x246   : > { %v872_v46 = vpop.f32.mrf.mxu3 }
 0x247   : > { %v798_v16 = vpop.f32.mrf.mxu2 }
 0x248   : > { %v720_v59 = vpop.f32.mrf.mxu1 }
 0x249   : > { %v725_v45 = vadd.f32 %v720_v59, %v649_v13  ;;  %v646_v41 = vpop.f32.mrf.mxu0 }
 0x24a   : > { %v650_v50 = vadd.f32 %v646_v41, %v574_v9 }
 0x24b   : > { %v801_v49 = vadd.f32 %v796_v43, %v725_v45 }
 0x24d   : > { %v877_v18 = vadd.f32 %v872_v46, %v801_v49 }
 0x24e   : > { %v874_v3 = vpop.f32.mrf.mxu3 }
 0x24f   : > { %v879_v56 = vmul.f32 0.125, %v877_v18 }
 0x250   : > { %v722_v48 = vpop.f32.mrf.mxu1 }
 0x251   : > { %v885_v58 = vadd.f32 %v1178_v11, %v879_v56  ;;  %v726_v61 = vadd.f32 %v722_v48, %v650_v50 }
 0x253   : > { %v887_v63 = vmax.f32 %v885_v58, 0.0  ;;  %v802_v2 = vadd.f32 %v798_v16, %v726_v61 }
 0x255   : > { %v878_v54 = vadd.f32 %v874_v3, %v802_v2  ;;  %889 = vst.msk [vmem:[%s251_s15] sm:$0xff] %vm292_vm0, %v887_v63 }
 0x257   : > { %v880_v0 = vmul.f32 0.125, %v878_v54 }
 0x259   : > { %v886_v31 = vadd.f32 %v1178_v11, %v880_v0 }
 0x25b   : > { %v888_v39 = vmax.f32 %v886_v31, 0.0 }
 0x25d   : > { %890 = vst.msk [vmem:[%s251_s15 + $0x8] sm:$0xff] %vm292_vm0, %v888_v39 }
 0x25e   : > { %1300 = shalt.err (!%p1297_p8)
}
 0x25f   : > { %s1352_s7 = smov 128   ;;  %s1353_s10 = smov 8  }
 0x260   : > { %1106 = dma.vmem_to_hbm [thread:$0]  (%p1422_p5), %s905_s16, 256, %s907_s17, %s892_s22, %s1352_s7, %s1352_s7, %s1353_s10  }
 0x261 PF: > { %p1118_p9 = scmp.ge.s32.totalorder %s1339_s21, 2  ;;  %s921_s11 = sand.u32 1, %s1327_s18  }
 0x262   : > { %s922_s12 = scalar_lea.sflag [#allocation4], %s921_s11 }
 0x263   : > { %p1113_p10 = pnand %p1118_p9, %p1426_p6 }
 0x265   : > { %p1114_p11 = pneg %p1113_p10 }
 0x267   : > { %1322 = dma.done.wait (%p1114_p11), %s922_s12, 256  }
 0x268   : > { %1324 = vsyncadd (%p1114_p11), %s922_s12, 4294967040  ;;  %p16_p12 = scmp.ge.s32.totalorder %s1409_s24, 4   ;;  %s1699_s18 = smov %s1331_s19 }
 0x269   : > { %s1700_s19 = smov %s1335_s20  ;;  %s1701_s20 = smov %s1420_s27 }
 0x26a   : > { %s1702_s21 = smov %s1409_s24  ;;  %18 = sbr.rel (!%p16_p12) target bundleno = 4 (0x4), region = 90 }
 0x26f   :  { %928 = vsyncpa [#allocation3], 1 }
 0x270   :  { %930 = vsyncpa [#allocation3 + $0x1], 1 }
 0x271   :  { %931 = vsyncpa [#allocation4], 1 }
 0x272   :  { %933 = vsyncpa [#allocation4 + $0x1], 1 }

</bundles_post_ra>
